<compile_context>
chip_gen: v7x
topology: tpu7x:2x2x1
jax: 0.10.0
libtpu: 0.0.40
codegen_flags: <defaults>
</compile_context>

<pallas_src>
import jax
import jax.numpy as jnp
from jax import lax
from jax.experimental import pallas as pl
from jax.experimental.pallas import tpu as pltpu


def _round_down(x: int, m: int) -> int:
    return (x // m) * m


def _cdiv(a: int, b: int) -> int:
    return -(-a // b)


def _sq_err_f32(x_f32):
    """(x - sign(x))**2 with torch.sign(0)==0 semantics, in 5 VPU ops."""
    t = jnp.abs(x_f32) - jnp.float32(1.0)
    return jnp.where(x_f32 == jnp.float32(0.0), jnp.float32(0.0), t * t)


# ---------------------------------------------------------------------------
# Kernels
# ---------------------------------------------------------------------------

def _tiny_kernel(x_ref, out_ref):
    """Single small block: whole-tile math, reduce rows to (1, N)."""
    x = x_ref[...].astype(jnp.float32)
    out_ref[...] = jnp.sum(_sq_err_f32(x), axis=0, keepdims=True)


def _make_stream_kernel(M, tile_m, chunk_rows, N, out_n, need_mask, unroll):
    """Streaming kernel: chunked row loop -> (8, out_n) partial per block."""
    n_chunks = tile_m // chunk_rows
    do_lane_reduce = (N % 128 == 0) and (N > 128)

    def tile_partial(x_ref, i, masked):
        def body(c, acc):
            r0 = pl.multiple_of(c * chunk_rows, chunk_rows)
            x = x_ref[pl.ds(r0, chunk_rows), :].astype(jnp.float32)
            sq = _sq_err_f32(x)
            if masked:
                row = (lax.broadcasted_iota(jnp.int32, sq.shape, 0)
                       + i * tile_m + r0)
                sq = jnp.where(row < M, sq, jnp.float32(0.0))
            # (chunk_rows, N) -> (chunk_rows//8, 8, N): layout-preserving reshape;
            # sum over axis 0 is pure vreg-wise VPU adds (no XLU per step).
            return acc + sq.reshape(chunk_rows // 8, 8, N).sum(axis=0)

        acc = lax.fori_loop(0, n_chunks, body,
                            jnp.zeros((8, N), jnp.float32), unroll=unroll)
        if do_lane_reduce:
            # Fold 128-lane groups together with static tile-aligned slices.
            lanes = acc[:, 0:128]
            for j in range(1, N // 128):
                lanes = lanes + acc[:, j * 128:(j + 1) * 128]
            acc = lanes
        return acc

    def kernel(x_ref, part_ref):
        i = pl.program_id(0)
        if need_mask:
            last = pl.num_programs(0) - 1

            @pl.when(i == last)
            def _():
                part_ref[...] = tile_partial(x_ref, i, True)

            @pl.when(i != last)
            def _():
                part_ref[...] = tile_partial(x_ref, i, False)
        else:
            part_ref[...] = tile_partial(x_ref, i, False)

    return kernel


# ---------------------------------------------------------------------------
# Layout selection + wrapper
# ---------------------------------------------------------------------------

def _choose_lane_dim(total):
    """Pick a lane (last) dim for a flat array of `total` elements.

    Returns (C, split). If split is True there is no good divisor: process the
    128-aligned prefix with the kernel and fold the short tail into the epilogue.
    """
    for c in (1024, 512, 256, 128):
        if total % c == 0:
            return c, False
    if total <= 1024:
        return total, False            # single (ragged) lane row; tiny anyway
    for c in range(1024, 127, -1):     # largest divisor in [128, 1024]
        if total % c == 0:
            return c, False
    return None, True


def mse_quantization(real_hash: jax.Array, *,
                     target_block_bytes: int = 8 * 1024 * 1024,
                     target_chunk_bytes: int = 512 * 1024) -> jax.Array:
    """Pallas implementation of MSE_Quantization.forward. Returns a scalar f32."""
    total = real_hash.size
    if total == 0:
        return jnp.float32(jnp.nan)    # mean of empty tensor (matches torch)

    itemsize = jnp.dtype(real_hash.dtype).itemsize
    flat = jnp.ravel(real_hash)        # handles 0-d and any-rank inputs

    C, split = _choose_lane_dim(total)
    tail_sum = jnp.float32(0.0)
    if split:
        main_len = _round_down(total, 128)
        for c in (1024, 512, 256, 128):
            if main_len % c == 0:
                C = c
                break
        x2d = flat[:main_len].reshape(-1, C)
        tail = flat[main_len:].astype(jnp.float32)
        tail_sum = jnp.sum(_sq_err_f32(tail))      # <128 elems, pure-JAX epilogue
    else:
        x2d = flat.reshape(-1, C)

    M, N = x2d.shape
    f32_bytes = M * N * 4
    tiny_cutoff = min(512 * 1024, target_block_bytes)

    sublane_min = {4: 8, 2: 16, 1: 32}.get(itemsize, 8)
    granule = max(8, sublane_min)      # safe row granularity for all dtypes

    if M < granule or f32_bytes <= tiny_cutoff:
        # --- tiny path: one block, whole-tile math (temps are small) ---------
        vmem_limit = int(min(40 << 20, max(32 << 20,
                                           2 * M * N * itemsize + (12 << 20))))
        row_sums = pl.pallas_call(
            _tiny_kernel,
            out_shape=jax.ShapeDtypeStruct((1, N), jnp.float32),
            grid=(1,),
            in_specs=[pl.BlockSpec((M, N), lambda i: (0, 0))],
            out_specs=pl.BlockSpec((1, N), lambda i: (0, 0)),
            compiler_params=pltpu.CompilerParams(vmem_limit_bytes=vmem_limit),
        )(x2d)
        main_sum = jnp.sum(row_sums)
    else:
        # --- streaming path: big auto-pipelined blocks, chunked accumulation -
        chunk_rows = max(granule,
                         _round_down(max(1, target_chunk_bytes // (N * 4)), granule))
        chunk_rows = min(chunk_rows, _round_down(M, granule))   # <= M, mult of 8
        block_rows = max(1, target_block_bytes // (N * itemsize))
        n_chunks = max(1, min(block_rows // chunk_rows, M // chunk_rows))
        tile_m = chunk_rows * n_chunks                           # <= M, mult of 8
        grid_m = _cdiv(M, tile_m)
        need_mask = (M % tile_m) != 0
        out_n = 128 if (N % 128 == 0) else N
        unroll = True if n_chunks <= 8 else 4

        kernel = _make_stream_kernel(M, tile_m, chunk_rows, N, out_n,
                                     need_mask, unroll)

        block_bytes = tile_m * N * itemsize
        vmem_limit = int(min(40 << 20, max(32 << 20,
                                           2 * block_bytes + (12 << 20))))

        partials = pl.pallas_call(
            kernel,
            out_shape=jax.ShapeDtypeStruct((grid_m, 8, out_n), jnp.float32),
            grid_spec=pltpu.PrefetchScalarGridSpec(
                num_scalar_prefetch=0,
                grid=(grid_m,),
                in_specs=[pl.BlockSpec((tile_m, N), lambda i: (i, 0))],
                out_specs=pl.BlockSpec((None, 8, out_n), lambda i: (i, 0, 0)),
            ),
            compiler_params=pltpu.CompilerParams(
                dimension_semantics=("parallel",),
                vmem_limit_bytes=vmem_limit,
            ),
        )(x2d)
        main_sum = jnp.sum(partials)

    return (main_sum + tail_sum) / jnp.float32(total)


# ---------------------------------------------------------------------------
# Self-test
# ---------------------------------------------------------------------------

if __name__ == "__main__":
    key = jax.random.PRNGKey(0)
    ks = jax.random.split(key, 6)

    def ref_loss(x):
        xf = x.astype(jnp.float32)
        return jnp.mean(jnp.square(xf - jnp.sign(xf)))

    cases = [
        # tiny path, lane-dense reshape (C=1024, single block)
        (jax.random.normal(ks[0], (16, 64), jnp.float32), {}, "tiny lane-dense"),
        # tiny path, awkward element count -> 740-wide single lane row
        (jax.random.normal(ks[1], (4, 5, 37), jnp.float32), {}, "tiny odd-lane"),
        # 0-d scalar input (regression for the reshape guard)
        (jax.random.normal(ks[2], (), jnp.float32), {}, "scalar"),
        # streaming path: multi-block, multi-chunk loop, ragged tail mask
        (jax.random.normal(ks[3], (130, 1024), jnp.float32),
         dict(target_block_bytes=256 * 1024, target_chunk_bytes=64 * 1024),
         "stream f32 ragged"),
        # streaming path with bf16 input (16-row sublane granule) + ragged mask
        ((1.5 * jax.random.normal(ks[4], (112, 512), jnp.float32)).astype(jnp.bfloat16),
         dict(target_block_bytes=64 * 1024), "stream bf16 ragged"),
        # prime element count: 128-aligned prefix in kernel + tail in epilogue
        (jax.random.normal(ks[5], (1031,), jnp.float32), {}, "prime prefix+tail"),
    ]

    for x, kw, name in cases:
        got = jax.block_until_ready(mse_quantization(x, **kw))
        want = ref_loss(x)
        assert jnp.allclose(got, want, rtol=1e-4, atol=1e-5), (name, x.shape, got, want)

    print("KERNEL_OK")
</pallas_src>

<mosaic_0001>
module attributes {stable_mosaic.version = 11 : i64} {
  func.func @_tiny_kernel(%arg0: i32, %arg1: memref<1x1024xf32, #tpu.memory_space<vmem>>, %arg2: memref<1x1024xf32, #tpu.memory_space<vmem>>) attributes {dimension_semantics = [#tpu.dimension_semantics<arbitrary>], iteration_bounds = array<i64: 1>, scalar_prefetch = 0 : i64, scratch_operands = 0 : i64, tpu.core_type = #tpu.core_type<tc>, window_params = [{pipeline_mode = #tpu.pipeline_mode<synchronous>, transform_indices = @transform_0, window_bounds = array<i64: 1, 1024>}, {pipeline_mode = #tpu.pipeline_mode<synchronous>, transform_indices = @transform_1, window_bounds = array<i64: 1, 1024>}]} {
    %c0 = arith.constant 0 : index
    %c0_0 = arith.constant 0 : index
    %0 = vector.load %arg1[%c0, %c0_0] : memref<1x1024xf32, #tpu.memory_space<vmem>>, vector<1x1024xf32>
    %1 = math.absf %0 : vector<1x1024xf32>
    %cst = arith.constant 1.000000e+00 : f32
    %2 = vector.broadcast %cst : f32 to vector<1x1024xf32>
    %3 = arith.subf %1, %2 : vector<1x1024xf32>
    %cst_1 = arith.constant 0.000000e+00 : f32
    %4 = vector.broadcast %cst_1 : f32 to vector<1x1024xf32>
    %5 = arith.cmpf oeq, %0, %4 : vector<1x1024xf32>
    %6 = arith.mulf %3, %3 : vector<1x1024xf32>
    %cst_2 = arith.constant 0.000000e+00 : f32
    %7 = vector.broadcast %cst_2 : f32 to vector<1x1024xf32>
    %8 = arith.select %5, %7, %6 : vector<1x1024xi1>, vector<1x1024xf32>
    %cst_3 = arith.constant dense<0.000000e+00> : vector<1024xf32>
    %9 = vector.multi_reduction <add>, %8, %cst_3 [0] : vector<1x1024xf32> to vector<1024xf32>
    %10 = vector.shape_cast %9 : vector<1024xf32> to vector<1x1024xf32>
    %c0_4 = arith.constant 0 : index
    %c0_5 = arith.constant 0 : index
    %11 = vector.load %arg2[%c0_4, %c0_5] : memref<1x1024xf32, #tpu.memory_space<vmem>>, vector<1x1024xf32>
    tpu.vector_store %arg2[%c0_4, %c0_5], %10 {strides = array<i32>} : memref<1x1024xf32, #tpu.memory_space<vmem>>, vector<1x1024xf32>,
    return
  }
  func.func @transform_0(%arg0: i32) -> (i32, i32) {
    %c0_i32 = arith.constant 0 : i32
    %c0_i32_0 = arith.constant 0 : i32
    %c0_i32_1 = arith.constant 0 : i32
    return %c0_i32, %c0_i32_0 : i32, i32
  }
  func.func @transform_1(%arg0: i32) -> (i32, i32) {
    %c0_i32 = arith.constant 0 : i32
    %c0_i32_0 = arith.constant 0 : i32
    %c0_i32_1 = arith.constant 0 : i32
    return %c0_i32, %c0_i32_0 : i32, i32
  }
}

</mosaic_0001>

<bundles_post_ra>
// kernel: tpu_custom_call.1
= control target key start
LH: loop header
LB: loop body
LE: loop exit
PB: predicated region body
PF: predicated region fallthrough
CT: control target
= control target key end

     0   :  { %6 = vsyncpa [#allocation3], 0  ;;  %s131_s0 = inlined_call_operand.hbm [shape: f32[1,1024], index: 0, kind: input, shape index: {}]   ;;  %s132_s1 = inlined_call_operand.hbm [shape: f32[1,1024], index: 1, kind: output, shape index: {}]  }
   0x1   :  { %7 = vsyncpa [#allocation4], 0  ;;  %s95_s6 = smov [#allocation2]   ;;  %s47_s10 = scalar_lea.hbm %s131_s0, 128 }
   0x2   :  { %s14_s7 = sshll.u32 %s95_s6, 4  ;;  %p48_p0 = scmp.ne.s32.totalorder %s131_s0, %s47_s10  ;;  %s15_s7 = int_to_ptr.vmem [resolvable:$true] %s14_s7 }
   0x3   :  { %p51_p1 = scmp.lt.u32.totalorder %s47_s10, %s131_s0 }
   0x5   :  { %p53_p2 = pnand %p51_p1, %p48_p0 }
   0x7   :  { %56 = shalt.err (!%p53_p2)
}
   0x8   :  { %s57_s15 = scalar_lea.vmem %s15_s7, 128  ;;  %p62_p4 = scmp.lt.s32.totalorder %s15_s7, %s15_s7 }
   0x9   :  { %p58_p3 = scmp.ne.s32.totalorder %s15_s7, %s57_s15  ;;  %p63_p5 = scmp.lt.s32.totalorder %s57_s15, %s57_s15 }
   0xb   :  { %p64_p6 = por %p63_p5, %p62_p4 }
   0xd   :  { %p65_p7 = pnand %p64_p6, %p58_p3 }
   0xf   :  { %68 = shalt.err (!%p65_p7)
}
  0x10   :  { %17 = dma.hbm_to_vmem [thread:$0]  %s131_s0, 128, %s15_s7, [#allocation3]  }
  0x11   :  { %91 = dma.done.wait [#allocation3], 128  }
  0x12   :  { %92 = vsyncadd [#allocation3], 4294967168  ;;  %v21_v0 = vld [vmem:[#allocation2] sm:$0xff]  ;;  %s96_s18 = smov [#allocation5]  }
  0x13   :  { %v22_v1 = vand.u32 2147483647, %v21_v0  ;;  %s35_s19 = sshll.u32 %s96_s18, 4  ;;  %vm24_vm0 = vcmp.eq.f32.partialorder %v21_v0, 0.0  ;;  %s36_s19 = int_to_ptr.vmem [resolvable:$true] %s35_s19 }
  0x14   :  { %s69_s20 = scalar_lea.vmem %s36_s19, 128  ;;  %p74_p9 = scmp.lt.s32.totalorder %s36_s19, %s36_s19 }
  0x15   :  { %v44_v2 = vadd.f32 -1.0, %v22_v1  ;;  %p70_p8 = scmp.ne.s32.totalorder %s36_s19, %s69_s20  ;;  %p75_p10 = scmp.lt.s32.totalorder %s69_s20, %s69_s20 }
  0x17   :  { %v25_v3 = vmul.f32 %v44_v2, %v44_v2  ;;  %p76_p11 = por %p75_p10, %p74_p9 }
  0x19   :  { %v26_v4 = vsel %vm24_vm0, 0.0, %v25_v3  ;;  %p77_p12 = pnand %p76_p11, %p70_p8 }
  0x1a   :  { %28 = vst [vmem:[#allocation5] sm:$0xff] %v26_v4 }
  0x1b   :  { %80 = shalt.err (!%p77_p12)
}
  0x1c   :  { %s81_s22 = scalar_lea.hbm %s132_s1, 128 }
  0x1d   :  { %p82_p13 = scmp.ne.s32.totalorder %s132_s1, %s81_s22  ;;  %p85_p0 = scmp.lt.u32.totalorder %s81_s22, %s132_s1 }
  0x1f   :  { %p87_p1 = pnand %p85_p0, %p82_p13 }
  0x21   :  { %90 = shalt.err (!%p87_p1)
}
  0x22   :  { %38 = dma.vmem_to_hbm [thread:$0]  %s36_s19, 128, %s132_s1, [#allocation4]  }
  0x23   :  { %93 = dma.done.wait [#allocation4], 128  }
  0x24   :  { %94 = vsyncadd [#allocation4], 4294967168 }
  0x25   :  { %42 = vsyncpa [#allocation3], 1 }
  0x26   :  { %43 = vsyncpa [#allocation4], 1 }

</bundles_post_ra>
